<compile_context>
chip_gen: v7x
topology: tpu7x:2x2x1
jax: 0.10.0
libtpu: 0.0.40
codegen_flags: <defaults>
</compile_context>

<pallas_src>
import jax
import jax.numpy as jnp
from jax.experimental import pallas as pl
from jax.experimental.pallas import tpu as pltpu

_MXU_DTYPE = jnp.bfloat16  # MXU operand dtype; accumulation stays f32.


def _pick_hidden_tile(hidden):
    """Largest hidden tile <= 512 that divides `hidden` (lane-dense), else full."""
    for tk in (512, 384, 256, 128):
        if hidden >= tk and hidden % tk == 0:
            return tk
    return hidden


# ----------------------------------------------------------------------------
# Fused kernel: q + (pos|neg) generators, hidden-axis tiled, + hash + loss
# ----------------------------------------------------------------------------
def _cmh_fused_kernel(
    q_ref, pn_ref,
    qw1_ref, qb1_ref, qw2_ref, qb2_ref,
    pw1_ref, pb1_ref, pw2_ref, pb2_ref,
    q_sig_ref, q_hash_ref,
    p_sig_ref, p_hash_ref,
    n_sig_ref, n_hash_ref,
    loss_ref,
    q_acc_ref, pn_acc_ref,
):
    k = pl.program_id(0)
    nk = pl.num_programs(0)

    @pl.when(k == 0)
    def _():
        q_acc_ref[...] = jnp.zeros_like(q_acc_ref)
        pn_acc_ref[...] = jnp.zeros_like(pn_acc_ref)

    # Layer 1 produces a *tile of hidden columns* (contraction dim = input dim,
    # which is NOT tiled), so tanh per tile is exact.  Layer 2 contracts over
    # hidden, hence the accumulation across grid steps.
    h_q = jnp.tanh(
        jnp.dot(q_ref[...].astype(_MXU_DTYPE), qw1_ref[...],
                preferred_element_type=jnp.float32)
        + qb1_ref[...]
    )
    q_acc_ref[...] += jnp.dot(h_q.astype(_MXU_DTYPE), qw2_ref[...],
                              preferred_element_type=jnp.float32)

    h_pn = jnp.tanh(
        jnp.dot(pn_ref[...].astype(_MXU_DTYPE), pw1_ref[...],
                preferred_element_type=jnp.float32)
        + pb1_ref[...]
    )
    pn_acc_ref[...] += jnp.dot(h_pn.astype(_MXU_DTYPE), pw2_ref[...],
                               preferred_element_type=jnp.float32)

    @pl.when(k == nk - 1)
    def _():
        batch = q_sig_ref.shape[0]

        q_logits = q_acc_ref[...] + qb2_ref[...]
        pn_logits = pn_acc_ref[...] + pb2_ref[...]

        q_sig = jax.nn.sigmoid(q_logits)
        pn_sig = jax.nn.sigmoid(pn_logits)
        p_sig = pn_sig[:batch]
        n_sig = pn_sig[batch:]

        q_sig_ref[...] = q_sig
        p_sig_ref[...] = p_sig
        n_sig_ref[...] = n_sig
        # int(sigmoid(z) + 0.5) == 1[z >= 0]; >= keeps logit == 0 -> 1,
        # matching torch's int(0.5 + 0.5) == 1.  int32 mirrors torch.IntTensor.
        q_hash_ref[...] = (q_logits >= 0.0).astype(jnp.int32)
        p_hash_ref[...] = (pn_logits[:batch] >= 0.0).astype(jnp.int32)
        n_hash_ref[...] = (pn_logits[batch:] >= 0.0).astype(jnp.int32)

        # Fused triplet loss (sigs still VMEM/vreg resident).
        pos_d = jnp.sum((q_sig - p_sig) ** 2, axis=1, keepdims=True)   # (B, 1)
        neg_d = jnp.sum((q_sig - n_sig) ** 2, axis=1, keepdims=True)   # (B, 1)
        cross = neg_d - pos_d
        # Stable log(sigmoid(x)) = min(x, 0) - log(1 + exp(-|x|)).
        log_sig = jnp.minimum(cross, 0.0) - jnp.log(1.0 + jnp.exp(-jnp.abs(cross)))
        loss_ref[...] = jnp.broadcast_to(-jnp.mean(log_sig), (1, 1))


@jax.jit
def _cmh_fused_forward(query, input_pos, input_neg, q_params, pn_params):
    """One pallas_call: q generator + fused pos/neg generator + triplet loss."""
    qw1, qb1, qw2, qb2 = q_params
    pw1, pb1, pw2, pb2 = pn_params

    batch = query.shape[0]
    image_in = qw1.shape[0]
    text_in = pw1.shape[0]
    hidden = qw1.shape[1]
    out_dim = qw2.shape[1]

    # Fuse pos/neg into one (2B, text_dim) generator pass.
    pn = jnp.concatenate([input_pos, input_neg], axis=0)
    batch2 = 2 * batch

    tk = _pick_hidden_tile(hidden)
    nk = hidden // tk

    def const_spec(shape):
        nd = len(shape)
        return pl.BlockSpec(shape, lambda k: (0,) * nd)

    in_specs = [
        const_spec((batch, image_in)),                       # query
        const_spec((batch2, text_in)),                       # pos|neg
        pl.BlockSpec((image_in, tk), lambda k: (0, k)),      # qw1 tile
        pl.BlockSpec((1, tk), lambda k: (0, k)),             # qb1 tile
        pl.BlockSpec((tk, out_dim), lambda k: (k, 0)),       # qw2 tile
        const_spec((1, out_dim)),                            # qb2
        pl.BlockSpec((text_in, tk), lambda k: (0, k)),       # pw1 tile
        pl.BlockSpec((1, tk), lambda k: (0, k)),             # pb1 tile
        pl.BlockSpec((tk, out_dim), lambda k: (k, 0)),       # pw2 tile
        const_spec((1, out_dim)),                            # pb2
    ]

    sig_sd = jax.ShapeDtypeStruct((batch, out_dim), jnp.float32)
    hash_sd = jax.ShapeDtypeStruct((batch, out_dim), jnp.int32)
    loss_sd = jax.ShapeDtypeStruct((1, 1), jnp.float32)

    out_specs = (
        const_spec((batch, out_dim)), const_spec((batch, out_dim)),
        const_spec((batch, out_dim)), const_spec((batch, out_dim)),
        const_spec((batch, out_dim)), const_spec((batch, out_dim)),
        const_spec((1, 1)),
    )

    # Size the scoped-VMEM limit from the actual per-step footprint
    # (2x for double-buffering), with floor/ceiling for padding slop and the
    # v7x 64 MiB physical budget.
    def nbytes(shape, dtype):
        n = 1
        for s in shape:
            n *= s
        return n * jnp.dtype(dtype).itemsize

    in_bytes = (
        nbytes((batch, image_in), jnp.float32)
        + nbytes((batch2, text_in), jnp.float32)
        + nbytes((image_in, tk), _MXU_DTYPE) + nbytes((1, tk), jnp.float32)
        + nbytes((tk, out_dim), _MXU_DTYPE) + nbytes((1, out_dim), jnp.float32)
        + nbytes((text_in, tk), _MXU_DTYPE) + nbytes((1, tk), jnp.float32)
        + nbytes((tk, out_dim), _MXU_DTYPE) + nbytes((1, out_dim), jnp.float32)
    )
    out_bytes = 6 * nbytes((batch, out_dim), jnp.float32) + nbytes((1, 1), jnp.float32)
    scratch_bytes = nbytes((batch, out_dim), jnp.float32) + nbytes((batch2, out_dim), jnp.float32)
    est = 2 * (in_bytes + out_bytes) + scratch_bytes
    vmem_limit = int(min(max(2 * est, 16 << 20), 56 << 20))

    # TODO(synk): for very large batch (>~8K rows) add a leading batch-tiled
    # grid axis marked "parallel" (query/pn/sig/hash blocks (TILE_B, dim) with
    # index_map lambda b, k: (b, ...), weight index_maps independent of b so
    # tiles stay resident), accumulate per-tile loss partial sums into SMEM
    # scratch, and finalize under pl.when(last).  At small batch the single
    # batch block + hidden-tiled grid is optimal.
    return pl.pallas_call(
        _cmh_fused_kernel,
        out_shape=(sig_sd, hash_sd, sig_sd, hash_sd, sig_sd, hash_sd, loss_sd),
        grid_spec=pltpu.PrefetchScalarGridSpec(
            num_scalar_prefetch=0,
            grid=(nk,),
            in_specs=in_specs,
            out_specs=out_specs,
            scratch_shapes=[
                pltpu.VMEM((batch, out_dim), jnp.float32),
                pltpu.VMEM((batch2, out_dim), jnp.float32),
            ],
        ),
        compiler_params=pltpu.CompilerParams(
            dimension_semantics=("arbitrary",),
            vmem_limit_bytes=vmem_limit,
        ),
    )(query, pn, qw1, qb1, qw2, qb2, pw1, pb1, pw2, pb2)


# ----------------------------------------------------------------------------
# CMH module (forward pass + loss, inference/forward semantics only)
# ----------------------------------------------------------------------------
class CMH:
    def __init__(self, image_dim=4096, text_dim=128, hidden_dim=4096,
                 output_dim=128, weight_decay=0.01, beta=2, gamma=0.1,
                 learning_rate=0.001, param=None, key=jax.random.PRNGKey(0)):
        self.image_dim = image_dim
        self.text_dim = text_dim
        self.hidden_dim = hidden_dim
        self.output_dim = output_dim
        # Optimizer hyper-parameters kept for interface fidelity (unused here).
        self.weight_decay = weight_decay
        self.learning_rate = learning_rate
        self.beta = beta
        self.gamma = gamma
        self.param = param

        k = jax.random.split(key, 4)
        # weights ~ N(0, 0.1), biases zero (matches _initialize_weights).
        # Stored transposed (in_features, out_features) and in bf16 (cast once
        # here); biases stay f32 (added in the f32 accumulator).
        self.ig_w1 = (0.1 * jax.random.normal(k[0], (image_dim, hidden_dim),
                                              jnp.float32)).astype(_MXU_DTYPE)
        self.ig_b1 = jnp.zeros((1, hidden_dim), jnp.float32)
        self.ig_w2 = (0.1 * jax.random.normal(k[1], (hidden_dim, output_dim),
                                              jnp.float32)).astype(_MXU_DTYPE)
        self.ig_b2 = jnp.zeros((1, output_dim), jnp.float32)

        self.tg_w1 = (0.1 * jax.random.normal(k[2], (text_dim, hidden_dim),
                                              jnp.float32)).astype(_MXU_DTYPE)
        self.tg_b1 = jnp.zeros((1, hidden_dim), jnp.float32)
        self.tg_w2 = (0.1 * jax.random.normal(k[3], (hidden_dim, output_dim),
                                              jnp.float32)).astype(_MXU_DTYPE)
        self.tg_b2 = jnp.zeros((1, output_dim), jnp.float32)

    @property
    def _iparams(self):
        return (self.ig_w1, self.ig_b1, self.ig_w2, self.ig_b2)

    @property
    def _tparams(self):
        return (self.tg_w1, self.tg_b1, self.tg_w2, self.tg_b2)

    def forward(self, query, input_pos, input_neg, flag):
        self.flag = flag
        if flag == 'i2t':
            q_params, pn_params = self._iparams, self._tparams
        else:
            q_params, pn_params = self._tparams, self._iparams
        (self.query_sig, self.query_hash,
         self.pos_sig, self.pos_hash,
         self.neg_sig, self.neg_hash,
         self._loss) = _cmh_fused_forward(query, input_pos, input_neg,
                                          q_params, pn_params)
        return self.query_sig

    def getloss(self):
        # Loss was fused into the forward kernel; stable log-sigmoid form of
        # -mean(log(sigmoid(||q-n||^2 - ||q-p||^2))).
        return self._loss[0, 0]


# ----------------------------------------------------------------------------
# Pure-JAX reference for correctness checks (bf16 weights, f32 accumulation)
# ----------------------------------------------------------------------------
def _ref_generator(x, w1, b1, w2, b2):
    h = jnp.tanh(jnp.dot(x.astype(_MXU_DTYPE), w1.astype(_MXU_DTYPE),
                         preferred_element_type=jnp.float32) + b1)
    logits = jnp.dot(h.astype(_MXU_DTYPE), w2.astype(_MXU_DTYPE),
                     preferred_element_type=jnp.float32) + b2
    return jax.nn.sigmoid(logits)


if __name__ == "__main__":
    batch = 8
    image_dim, text_dim, hidden_dim, output_dim = 64, 32, 128, 128

    model = CMH(image_dim=image_dim, text_dim=text_dim,
                hidden_dim=hidden_dim, output_dim=output_dim,
                key=jax.random.PRNGKey(0))

    kq, kp, kn = jax.random.split(jax.random.PRNGKey(1), 3)
    query = jax.random.normal(kq, (batch, image_dim), jnp.float32)
    input_pos = jax.random.normal(kp, (batch, text_dim), jnp.float32)
    input_neg = jax.random.normal(kn, (batch, text_dim), jnp.float32)

    out = jax.block_until_ready(
        model.forward(query, input_pos, input_neg, flag='i2t'))

    # --- correctness checks -------------------------------------------------
    ref_q = _ref_generator(query, *model._iparams)
    ref_p = _ref_generator(input_pos, *model._tparams)
    ref_n = _ref_generator(input_neg, *model._tparams)

    assert out.shape == (batch, output_dim)
    assert jnp.allclose(out, ref_q, atol=2e-3), "query_sig mismatch vs ref"
    assert jnp.allclose(model.pos_sig, ref_p, atol=2e-3), "pos_sig mismatch"
    assert jnp.allclose(model.neg_sig, ref_n, atol=2e-3), "neg_sig mismatch"

    for h in (model.query_hash, model.pos_hash, model.neg_hash):
        assert h.dtype == jnp.int32
        assert bool(jnp.all((h == 0) | (h == 1))), "hash not in {0,1}"

    # fused loss matches a plain-JAX recomputation from the kernel's own sigs
    pos_d = jnp.sum((model.query_sig - model.pos_sig) ** 2, axis=1)
    neg_d = jnp.sum((model.query_sig - model.neg_sig) ** 2, axis=1)
    cross = neg_d - pos_d
    ref_loss = -jnp.mean(jnp.minimum(cross, 0.0)
                         - jnp.log(1.0 + jnp.exp(-jnp.abs(cross))))
    loss = jax.block_until_ready(model.getloss())
    assert jnp.isfinite(loss)
    assert jnp.allclose(loss, ref_loss, atol=1e-5), "fused loss mismatch"

    # also exercise the t2i path once (swapped generators)
    out_t2i = jax.block_until_ready(
        model.forward(input_pos, query, query, flag='t2i'))
    assert out_t2i.shape == (batch, output_dim)

    print("KERNEL_OK")
</pallas_src>

<mosaic_0001>
module attributes {stable_mosaic.version = 11 : i64} {
  func.func @_cmh_fused_kernel(%arg0: i32, %arg1: memref<8x64xf32, #tpu.memory_space<vmem>>, %arg2: memref<16x32xf32, #tpu.memory_space<vmem>>, %arg3: memref<64x128xbf16, #tpu.memory_space<vmem>>, %arg4: memref<1x128xf32, #tpu.memory_space<vmem>>, %arg5: memref<128x128xbf16, #tpu.memory_space<vmem>>, %arg6: memref<1x128xf32, #tpu.memory_space<vmem>>, %arg7: memref<32x128xbf16, #tpu.memory_space<vmem>>, %arg8: memref<1x128xf32, #tpu.memory_space<vmem>>, %arg9: memref<128x128xbf16, #tpu.memory_space<vmem>>, %arg10: memref<1x128xf32, #tpu.memory_space<vmem>>, %arg11: memref<8x128xf32, #tpu.memory_space<vmem>>, %arg12: memref<8x128xi32, #tpu.memory_space<vmem>>, %arg13: memref<8x128xf32, #tpu.memory_space<vmem>>, %arg14: memref<8x128xi32, #tpu.memory_space<vmem>>, %arg15: memref<8x128xf32, #tpu.memory_space<vmem>>, %arg16: memref<8x128xi32, #tpu.memory_space<vmem>>, %arg17: memref<1x1xf32, #tpu.memory_space<vmem>>, %arg18: memref<8x128xf32, #tpu.memory_space<vmem>>, %arg19: memref<16x128xf32, #tpu.memory_space<vmem>>) attributes {dimension_semantics = [#tpu.dimension_semantics<arbitrary>], iteration_bounds = array<i64: 1>, scalar_prefetch = 0 : i64, scratch_operands = 2 : i64, tpu.core_type = #tpu.core_type<tc>, window_params = [{pipeline_mode = #tpu.pipeline_mode<synchronous>, transform_indices = @transform_0, window_bounds = array<i64: 8, 64>}, {pipeline_mode = #tpu.pipeline_mode<synchronous>, transform_indices = @transform_1, window_bounds = array<i64: 16, 32>}, {transform_indices = @transform_2, window_bounds = array<i64: 64, 128>}, {transform_indices = @transform_3, window_bounds = array<i64: 1, 128>}, {transform_indices = @transform_4, window_bounds = array<i64: 128, 128>}, {pipeline_mode = #tpu.pipeline_mode<synchronous>, transform_indices = @transform_5, window_bounds = array<i64: 1, 128>}, {transform_indices = @transform_6, window_bounds = array<i64: 32, 128>}, {transform_indices = @transform_7, window_bounds = array<i64: 1, 128>}, {transform_indices = @transform_8, window_bounds = array<i64: 128, 128>}, {pipeline_mode = #tpu.pipeline_mode<synchronous>, transform_indices = @transform_9, window_bounds = array<i64: 1, 128>}, {pipeline_mode = #tpu.pipeline_mode<synchronous>, transform_indices = @transform_10, window_bounds = array<i64: 8, 128>}, {pipeline_mode = #tpu.pipeline_mode<synchronous>, transform_indices = @transform_11, window_bounds = array<i64: 8, 128>}, {pipeline_mode = #tpu.pipeline_mode<synchronous>, transform_indices = @transform_12, window_bounds = array<i64: 8, 128>}, {pipeline_mode = #tpu.pipeline_mode<synchronous>, transform_indices = @transform_13, window_bounds = array<i64: 8, 128>}, {pipeline_mode = #tpu.pipeline_mode<synchronous>, transform_indices = @transform_14, window_bounds = array<i64: 8, 128>}, {pipeline_mode = #tpu.pipeline_mode<synchronous>, transform_indices = @transform_15, window_bounds = array<i64: 8, 128>}, {pipeline_mode = #tpu.pipeline_mode<synchronous>, transform_indices = @transform_16, window_bounds = array<i64: 1, 1>}]} {
    %c0_i32 = arith.constant 0 : i32
    %0 = arith.cmpi eq, %arg0, %c0_i32 : i32
    %1 = arith.extui %0 : i1 to i32
    %c0_i32_0 = arith.constant 0 : i32
    %2 = arith.cmpi ne, %1, %c0_i32_0 : i32
    scf.if %2 {
      %cst_29 = arith.constant 0.000000e+00 : f32
      %34 = vector.broadcast %cst_29 : f32 to vector<8x128xf32>
      %c0_30 = arith.constant 0 : index
      %c0_31 = arith.constant 0 : index
      %35 = vector.load %arg18[%c0_30, %c0_31] : memref<8x128xf32, #tpu.memory_space<vmem>>, vector<8x128xf32>
      tpu.vector_store %arg18[%c0_30, %c0_31], %34 {strides = array<i32>} : memref<8x128xf32, #tpu.memory_space<vmem>>, vector<8x128xf32>,
      %cst_32 = arith.constant 0.000000e+00 : f32
      %36 = vector.broadcast %cst_32 : f32 to vector<16x128xf32>
      %c0_33 = arith.constant 0 : index
      %c0_34 = arith.constant 0 : index
      %37 = vector.load %arg19[%c0_33, %c0_34] : memref<16x128xf32, #tpu.memory_space<vmem>>, vector<16x128xf32>
      tpu.vector_store %arg19[%c0_33, %c0_34], %36 {strides = array<i32>} : memref<16x128xf32, #tpu.memory_space<vmem>>, vector<16x128xf32>,
    } else {
    }
    %c0 = arith.constant 0 : index
    %c0_1 = arith.constant 0 : index
    %3 = vector.load %arg1[%c0, %c0_1] : memref<8x64xf32, #tpu.memory_space<vmem>>, vector<8x64xf32>
    %4 = arith.truncf %3 : vector<8x64xf32> to vector<8x64xbf16>
    %c0_2 = arith.constant 0 : index
    %c0_3 = arith.constant 0 : index
    %5 = vector.load %arg3[%c0_2, %c0_3] : memref<64x128xbf16, #tpu.memory_space<vmem>>, vector<64x128xbf16>
    %cst = arith.constant dense<0.000000e+00> : vector<8x128xf32>
    %6 = tpu.matmul %4, %5, %cst {dimension_numbers = #tpu.dot_dimension_numbers<[1], [0], [0], [1], [0, 0, 1, 1], [], []>} : vector<8x64xbf16>, vector<64x128xbf16>, vector<8x128xf32> -> vector<8x128xf32>
    %c0_4 = arith.constant 0 : index
    %c0_5 = arith.constant 0 : index
    %7 = vector.load %arg4[%c0_4, %c0_5] : memref<1x128xf32, #tpu.memory_space<vmem>>, vector<1x128xf32>
    %8 = vector.broadcast %7 : vector<1x128xf32> to vector<8x128xf32>
    %9 = arith.addf %6, %8 : vector<8x128xf32>
    %10 = math.tanh %9 : vector<8x128xf32>
    %c0_6 = arith.constant 0 : index
    %c0_7 = arith.constant 0 : index
    %11 = vector.load %arg18[%c0_6, %c0_7] : memref<8x128xf32, #tpu.memory_space<vmem>>, vector<8x128xf32>
    %12 = arith.truncf %10 : vector<8x128xf32> to vector<8x128xbf16>
    %c0_8 = arith.constant 0 : index
    %c0_9 = arith.constant 0 : index
    %13 = vector.load %arg5[%c0_8, %c0_9] : memref<128x128xbf16, #tpu.memory_space<vmem>>, vector<128x128xbf16>
    %cst_10 = arith.constant dense<0.000000e+00> : vector<8x128xf32>
    %14 = tpu.matmul %12, %13, %cst_10 {dimension_numbers = #tpu.dot_dimension_numbers<[1], [0], [0], [1], [0, 0, 1, 1], [], []>} : vector<8x128xbf16>, vector<128x128xbf16>, vector<8x128xf32> -> vector<8x128xf32>
    %15 = arith.addf %11, %14 : vector<8x128xf32>
    %c0_11 = arith.constant 0 : index
    %c0_12 = arith.constant 0 : index
    %16 = vector.load %arg18[%c0_11, %c0_12] : memref<8x128xf32, #tpu.memory_space<vmem>>, vector<8x128xf32>
    tpu.vector_store %arg18[%c0_11, %c0_12], %15 {strides = array<i32>} : memref<8x128xf32, #tpu.memory_space<vmem>>, vector<8x128xf32>,
    %c0_13 = arith.constant 0 : index
    %c0_14 = arith.constant 0 : index
    %17 = vector.load %arg2[%c0_13, %c0_14] : memref<16x32xf32, #tpu.memory_space<vmem>>, vector<16x32xf32>
    %18 = arith.truncf %17 : vector<16x32xf32> to vector<16x32xbf16>
    %c0_15 = arith.constant 0 : index
    %c0_16 = arith.constant 0 : index
    %19 = vector.load %arg7[%c0_15, %c0_16] : memref<32x128xbf16, #tpu.memory_space<vmem>>, vector<32x128xbf16>
    %cst_17 = arith.constant dense<0.000000e+00> : vector<16x128xf32>
    %20 = tpu.matmul %18, %19, %cst_17 {dimension_numbers = #tpu.dot_dimension_numbers<[1], [0], [0], [1], [0, 0, 1, 1], [], []>} : vector<16x32xbf16>, vector<32x128xbf16>, vector<16x128xf32> -> vector<16x128xf32>
    %c0_18 = arith.constant 0 : index
    %c0_19 = arith.constant 0 : index
    %21 = vector.load %arg8[%c0_18, %c0_19] : memref<1x128xf32, #tpu.memory_space<vmem>>, vector<1x128xf32>
    %22 = vector.broadcast %21 : vector<1x128xf32> to vector<16x128xf32>
    %23 = arith.addf %20, %22 : vector<16x128xf32>
    %24 = math.tanh %23 : vector<16x128xf32>
    %c0_20 = arith.constant 0 : index
    %c0_21 = arith.constant 0 : index
    %25 = vector.load %arg19[%c0_20, %c0_21] : memref<16x128xf32, #tpu.memory_space<vmem>>, vector<16x128xf32>
    %26 = arith.truncf %24 : vector<16x128xf32> to vector<16x128xbf16>
    %c0_22 = arith.constant 0 : index
    %c0_23 = arith.constant 0 : index
    %27 = vector.load %arg9[%c0_22, %c0_23] : memref<128x128xbf16, #tpu.memory_space<vmem>>, vector<128x128xbf16>
    %cst_24 = arith.constant dense<0.000000e+00> : vector<16x128xf32>
    %28 = tpu.matmul %26, %27, %cst_24 {dimension_numbers = #tpu.dot_dimension_numbers<[1], [0], [0], [1], [0, 0, 1, 1], [], []>} : vector<16x128xbf16>, vector<128x128xbf16>, vector<16x128xf32> -> vector<16x128xf32>
    %29 = arith.addf %25, %28 : vector<16x128xf32>
    %c0_25 = arith.constant 0 : index
    %c0_26 = arith.constant 0 : index
    %30 = vector.load %arg19[%c0_25, %c0_26] : memref<16x128xf32, #tpu.memory_space<vmem>>, vector<16x128xf32>
    tpu.vector_store %arg19[%c0_25, %c0_26], %29 {strides = array<i32>} : memref<16x128xf32, #tpu.memory_space<vmem>>, vector<16x128xf32>,
    %c0_i32_27 = arith.constant 0 : i32
    %31 = arith.cmpi eq, %arg0, %c0_i32_27 : i32
    %32 = arith.extui %31 : i1 to i32
    %c0_i32_28 = arith.constant 0 : i32
    %33 = arith.cmpi ne, %32, %c0_i32_28 : i32
    scf.if %33 {
      %c0_29 = arith.constant 0 : index
      %c0_30 = arith.constant 0 : index
      %34 = vector.load %arg18[%c0_29, %c0_30] : memref<8x128xf32, #tpu.memory_space<vmem>>, vector<8x128xf32>
      %c0_31 = arith.constant 0 : index
      %c0_32 = arith.constant 0 : index
      %35 = vector.load %arg6[%c0_31, %c0_32] : memref<1x128xf32, #tpu.memory_space<vmem>>, vector<1x128xf32>
      %36 = vector.broadcast %35 : vector<1x128xf32> to vector<8x128xf32>
      %37 = arith.addf %34, %36 : vector<8x128xf32>
      %c0_33 = arith.constant 0 : index
      %c0_34 = arith.constant 0 : index
      %38 = vector.load %arg19[%c0_33, %c0_34] : memref<16x128xf32, #tpu.memory_space<vmem>>, vector<16x128xf32>
      %c0_35 = arith.constant 0 : index
      %c0_36 = arith.constant 0 : index
      %39 = vector.load %arg10[%c0_35, %c0_36] : memref<1x128xf32, #tpu.memory_space<vmem>>, vector<1x128xf32>
      %40 = vector.broadcast %39 : vector<1x128xf32> to vector<16x128xf32>
      %41 = arith.addf %38, %40 : vector<16x128xf32>
      %42 = arith.negf %37 : vector<8x128xf32>
      %43 = math.exp %42 : vector<8x128xf32>
      %cst_37 = arith.constant 1.000000e+00 : f32
      %44 = vector.broadcast %cst_37 : f32 to vector<8x128xf32>
      %45 = arith.addf %44, %43 : vector<8x128xf32>
      %46 = arith.divf %44, %45 : vector<8x128xf32>
      %47 = arith.negf %41 : vector<16x128xf32>
      %48 = math.exp %47 : vector<16x128xf32>
      %cst_38 = arith.constant 1.000000e+00 : f32
      %49 = vector.broadcast %cst_38 : f32 to vector<16x128xf32>
      %50 = arith.addf %49, %48 : vector<16x128xf32>
      %51 = arith.divf %49, %50 : vector<16x128xf32>
      %52 = vector.extract_strided_slice %51 {offsets = [0, 0], sizes = [8, 128], strides = [1, 1]} : vector<16x128xf32> to vector<8x128xf32>
      %53 = vector.extract_strided_slice %51 {offsets = [8, 0], sizes = [8, 128], strides = [1, 1]} : vector<16x128xf32> to vector<8x128xf32>
      %c0_39 = arith.constant 0 : index
      %c0_40 = arith.constant 0 : index
      %54 = vector.load %arg11[%c0_39, %c0_40] : memref<8x128xf32, #tpu.memory_space<vmem>>, vector<8x128xf32>
      tpu.vector_store %arg11[%c0_39, %c0_40], %46 {strides = array<i32>} : memref<8x128xf32, #tpu.memory_space<vmem>>, vector<8x128xf32>,
      %c0_41 = arith.constant 0 : index
      %c0_42 = arith.constant 0 : index
      %55 = vector.load %arg13[%c0_41, %c0_42] : memref<8x128xf32, #tpu.memory_space<vmem>>, vector<8x128xf32>
      tpu.vector_store %arg13[%c0_41, %c0_42], %52 {strides = array<i32>} : memref<8x128xf32, #tpu.memory_space<vmem>>, vector<8x128xf32>,
      %c0_43 = arith.constant 0 : index
      %c0_44 = arith.constant 0 : index
      %56 = vector.load %arg15[%c0_43, %c0_44] : memref<8x128xf32, #tpu.memory_space<vmem>>, vector<8x128xf32>
      tpu.vector_store %arg15[%c0_43, %c0_44], %53 {strides = array<i32>} : memref<8x128xf32, #tpu.memory_space<vmem>>, vector<8x128xf32>,
      %cst_45 = arith.constant 0.000000e+00 : f32
      %57 = vector.broadcast %cst_45 : f32 to vector<8x128xf32>
      %58 = arith.cmpf oge, %37, %57 : vector<8x128xf32>
      %59 = arith.extui %58 : vector<8x128xi1> to vector<8x128xi32>
      %c0_46 = arith.constant 0 : index
      %c0_47 = arith.constant 0 : index
      %60 = vector.load %arg12[%c0_46, %c0_47] : memref<8x128xi32, #tpu.memory_space<vmem>>, vector<8x128xi32>
      tpu.vector_store %arg12[%c0_46, %c0_47], %59 {strides = array<i32>} : memref<8x128xi32, #tpu.memory_space<vmem>>, vector<8x128xi32>,
      %61 = vector.extract_strided_slice %41 {offsets = [0, 0], sizes = [8, 128], strides = [1, 1]} : vector<16x128xf32> to vector<8x128xf32>
      %cst_48 = arith.constant 0.000000e+00 : f32
      %62 = vector.broadcast %cst_48 : f32 to vector<8x128xf32>
      %63 = arith.cmpf oge, %61, %62 : vector<8x128xf32>
      %64 = arith.extui %63 : vector<8x128xi1> to vector<8x128xi32>
      %c0_49 = arith.constant 0 : index
      %c0_50 = arith.constant 0 : index
      %65 = vector.load %arg14[%c0_49, %c0_50] : memref<8x128xi32, #tpu.memory_space<vmem>>, vector<8x128xi32>
      tpu.vector_store %arg14[%c0_49, %c0_50], %64 {strides = array<i32>} : memref<8x128xi32, #tpu.memory_space<vmem>>, vector<8x128xi32>,
      %66 = vector.extract_strided_slice %41 {offsets = [8, 0], sizes = [8, 128], strides = [1, 1]} : vector<16x128xf32> to vector<8x128xf32>
      %cst_51 = arith.constant 0.000000e+00 : f32
      %67 = vector.broadcast %cst_51 : f32 to vector<8x128xf32>
      %68 = arith.cmpf oge, %66, %67 : vector<8x128xf32>
      %69 = arith.extui %68 : vector<8x128xi1> to vector<8x128xi32>
      %c0_52 = arith.constant 0 : index
      %c0_53 = arith.constant 0 : index
      %70 = vector.load %arg16[%c0_52, %c0_53] : memref<8x128xi32, #tpu.memory_space<vmem>>, vector<8x128xi32>
      tpu.vector_store %arg16[%c0_52, %c0_53], %69 {strides = array<i32>} : memref<8x128xi32, #tpu.memory_space<vmem>>, vector<8x128xi32>,
      %71 = arith.subf %46, %52 : vector<8x128xf32>
      %72 = arith.mulf %71, %71 : vector<8x128xf32>
      %cst_54 = arith.constant dense<0.000000e+00> : vector<8xf32>
      %73 = vector.multi_reduction <add>, %72, %cst_54 [1] : vector<8x128xf32> to vector<8xf32>
      %74 = vector.shape_cast %73 : vector<8xf32> to vector<8x1xf32>
      %75 = arith.subf %46, %53 : vector<8x128xf32>
      %76 = arith.mulf %75, %75 : vector<8x128xf32>
      %cst_55 = arith.constant dense<0.000000e+00> : vector<8xf32>
      %77 = vector.multi_reduction <add>, %76, %cst_55 [1] : vector<8x128xf32> to vector<8xf32>
      %78 = vector.shape_cast %77 : vector<8xf32> to vector<8x1xf32>
      %79 = arith.subf %78, %74 : vector<8x1xf32>
      %cst_56 = arith.constant 0.000000e+00 : f32
      %80 = vector.broadcast %cst_56 : f32 to vector<8x1xf32>
      %81 = arith.minimumf %79, %80 : vector<8x1xf32>
      %82 = math.absf %79 : vector<8x1xf32>
      %cst_57 = arith.constant 0.000000e+00 : f32
      %83 = vector.broadcast %cst_57 : f32 to vector<8x1xf32>
      %84 = arith.subf %83, %82 : vector<8x1xf32>
      %85 = math.exp %84 : vector<8x1xf32>
      %cst_58 = arith.constant 1.000000e+00 : f32
      %86 = vector.broadcast %cst_58 : f32 to vector<8x1xf32>
      %87 = arith.addf %86, %85 : vector<8x1xf32>
      %88 = math.log %87 : vector<8x1xf32>
      %89 = arith.subf %81, %88 : vector<8x1xf32>
      %90 = vector.shape_cast %89 : vector<8x1xf32> to vector<1x8x1xf32>
      %cst_59 = arith.constant dense<0.000000e+00> : vector<1xf32>
      %91 = vector.multi_reduction <add>, %90, %cst_59 [1, 2] : vector<1x8x1xf32> to vector<1xf32>
      %92 = vector.shape_cast %91 : vector<1xf32> to vector<1x1x1xf32>
      %93 = vector.extract %92[0, 0, 0] : f32 from vector<1x1x1xf32>
      %cst_60 = arith.constant 8.000000e+00 : f32
      %94 = arith.divf %93, %cst_60 : f32
      %cst_61 = arith.constant 0.000000e+00 : f32
      %95 = arith.subf %cst_61, %94 : f32
      %96 = vector.broadcast %95 : f32 to vector<1x1xf32>
      %c0_62 = arith.constant 0 : index
      %c0_63 = arith.constant 0 : index
      %97 = vector.load %arg17[%c0_62, %c0_63] : memref<1x1xf32, #tpu.memory_space<vmem>>, vector<1x1xf32>
      tpu.vector_store %arg17[%c0_62, %c0_63], %96 {strides = array<i32>} : memref<1x1xf32, #tpu.memory_space<vmem>>, vector<1x1xf32>,
    } else {
    }
    return
  }
  func.func @transform_0(%arg0: i32) -> (i32, i32) {
    %c0_i32 = arith.constant 0 : i32
    %c0_i32_0 = arith.constant 0 : i32
    %c0_i32_1 = arith.constant 0 : i32
    return %c0_i32, %c0_i32_0 : i32, i32
  }
  func.func @transform_1(%arg0: i32) -> (i32, i32) {
    %c0_i32 = arith.constant 0 : i32
    %c0_i32_0 = arith.constant 0 : i32
    %c0_i32_1 = arith.constant 0 : i32
    return %c0_i32, %c0_i32_0 : i32, i32
  }
  func.func @transform_2(%arg0: i32) -> (i32, i32) {
    %c0_i32 = arith.constant 0 : i32
    %c0_i32_0 = arith.constant 0 : i32
    return %c0_i32, %arg0 : i32, i32
  }
  func.func @transform_3(%arg0: i32) -> (i32, i32) {
    %c0_i32 = arith.constant 0 : i32
    %c0_i32_0 = arith.constant 0 : i32
    return %c0_i32, %arg0 : i32, i32
  }
  func.func @transform_4(%arg0: i32) -> (i32, i32) {
    %c0_i32 = arith.constant 0 : i32
    %c0_i32_0 = arith.constant 0 : i32
    return %arg0, %c0_i32 : i32, i32
  }
  func.func @transform_5(%arg0: i32) -> (i32, i32) {
    %c0_i32 = arith.constant 0 : i32
    %c0_i32_0 = arith.constant 0 : i32
    %c0_i32_1 = arith.constant 0 : i32
    return %c0_i32, %c0_i32_0 : i32, i32
  }
  func.func @transform_6(%arg0: i32) -> (i32, i32) {
    %c0_i32 = arith.constant 0 : i32
    %c0_i32_0 = arith.constant 0 : i32
    return %c0_i32, %arg0 : i32, i32
  }
  func.func @transform_7(%arg0: i32) -> (i32, i32) {
    %c0_i32 = arith.constant 0 : i32
    %c0_i32_0 = arith.constant 0 : i32
    return %c0_i32, %arg0 : i32, i32
  }
  func.func @transform_8(%arg0: i32) -> (i32, i32) {
    %c0_i32 = arith.constant 0 : i32
    %c0_i32_0 = arith.constant 0 : i32
    return %arg0, %c0_i32 : i32, i32
  }
  func.func @transform_9(%arg0: i32) -> (i32, i32) {
    %c0_i32 = arith.constant 0 : i32
    %c0_i32_0 = arith.constant 0 : i32
    %c0_i32_1 = arith.constant 0 : i32
    return %c0_i32, %c0_i32_0 : i32, i32
  }
  func.func @transform_10(%arg0: i32) -> (i32, i32) {
    %c0_i32 = arith.constant 0 : i32
    %c0_i32_0 = arith.constant 0 : i32
    %c0_i32_1 = arith.constant 0 : i32
    return %c0_i32, %c0_i32_0 : i32, i32
  }
  func.func @transform_11(%arg0: i32) -> (i32, i32) {
    %c0_i32 = arith.constant 0 : i32
    %c0_i32_0 = arith.constant 0 : i32
    %c0_i32_1 = arith.constant 0 : i32
    return %c0_i32, %c0_i32_0 : i32, i32
  }
  func.func @transform_12(%arg0: i32) -> (i32, i32) {
    %c0_i32 = arith.constant 0 : i32
    %c0_i32_0 = arith.constant 0 : i32
    %c0_i32_1 = arith.constant 0 : i32
    return %c0_i32, %c0_i32_0 : i32, i32
  }
  func.func @transform_13(%arg0: i32) -> (i32, i32) {
    %c0_i32 = arith.constant 0 : i32
    %c0_i32_0 = arith.constant 0 : i32
    %c0_i32_1 = arith.constant 0 : i32
    return %c0_i32, %c0_i32_0 : i32, i32
  }
  func.func @transform_14(%arg0: i32) -> (i32, i32) {
    %c0_i32 = arith.constant 0 : i32
    %c0_i32_0 = arith.constant 0 : i32
    %c0_i32_1 = arith.constant 0 : i32
    return %c0_i32, %c0_i32_0 : i32, i32
  }
  func.func @transform_15(%arg0: i32) -> (i32, i32) {
    %c0_i32 = arith.constant 0 : i32
    %c0_i32_0 = arith.constant 0 : i32
    %c0_i32_1 = arith.constant 0 : i32
    return %c0_i32, %c0_i32_0 : i32, i32
  }
  func.func @transform_16(%arg0: i32) -> (i32, i32) {
    %c0_i32 = arith.constant 0 : i32
    %c0_i32_0 = arith.constant 0 : i32
    %c0_i32_1 = arith.constant 0 : i32
    return %c0_i32, %c0_i32_0 : i32, i32
  }
}

</mosaic_0001>

<bundles_post_ra>
// kernel: _cmh_fused_forward.1
= control target key start
LH: loop header
LB: loop body
LE: loop exit
PB: predicated region body
PF: predicated region fallthrough
CT: control target
= control target key end

     0   :  { %s1466_s0 = inlined_call_operand.hbm [shape: f32[8,64], index: 0, kind: input, shape index: {}]   ;;  %s1467_s1 = inlined_call_operand.vmem [shape: f32[16,32], index: 1, kind: input, shape index: {}]   ;;  %s1468_s2 = inlined_call_operand.hbm [shape: bf16[64,128], index: 2, kind: input, shape index: {}]   ;;  %s1469_s3 = inlined_call_operand.vmem [shape: f32[1,128], index: 3, kind: input, shape index: {}]   ;;  %s1470_s4 = inlined_call_operand.hbm [shape: bf16[128,128], index: 4, kind: input, shape index: {}]   ;;  %s1471_s5 = inlined_call_operand.vmem [shape: f32[1,128], index: 5, kind: input, shape index: {}]   ;;  %s1472_s6 = inlined_call_operand.hbm [shape: bf16[32,128], index: 6, kind: input, shape index: {}]   ;;  %s1473_s7 = inlined_call_operand.hbm [shape: f32[1,128], index: 7, kind: input, shape index: {}]   ;;  %s1474_s8 = inlined_call_operand.vmem [shape: bf16[128,128], index: 8, kind: input, shape index: {}]   ;;  %s1475_s9 = inlined_call_operand.vmem [shape: f32[1,128], index: 9, kind: input, shape index: {}]   ;;  %s1476_s10 = inlined_call_operand.hbm [shape: f32[8,128], index: 10, kind: output, shape index: {0}]   ;;  %s1477_s11 = inlined_call_operand.hbm [shape: s32[8,128], index: 11, kind: output, shape index: {1}]   ;;  %s1478_s12 = inlined_call_operand.hbm [shape: f32[8,128], index: 12, kind: output, shape index: {2}]   ;;  %s1479_s13 = inlined_call_operand.hbm [shape: s32[8,128], index: 13, kind: output, shape index: {3}]   ;;  %s1480_s14 = inlined_call_operand.hbm [shape: f32[8,128], index: 14, kind: output, shape index: {4}]   ;;  %s1481_s15 = inlined_call_operand.hbm [shape: s32[8,128], index: 15, kind: output, shape index: {5}]   ;;  %s1482_s16 = inlined_call_operand.hbm [shape: f32[1,1], index: 16, kind: output, shape index: {6}]  }
   0x1   :  { %1485 = sst [smem:[#allocation30_spill]] %s1466_s0 }
   0x2   :  { %1486 = sst [smem:[#allocation31_spill]] %s1482_s16 }
   0x3   :  { %22 = vsyncpa [#allocation5], 0 }
   0x4   :  { %23 = vsyncpa [#allocation8], 0 }
   0x5   :  { %24 = vsyncpa [#allocation11], 0 }
   0x6   :  { %25 = vsyncpa [#allocation6], 0 }
   0x7   :  { %26 = vsyncpa [#allocation15], 0 }
   0x8   :  { %27 = vsyncpa [#allocation18], 0 }
   0x9   :  { %28 = vsyncpa [#allocation21], 0  ;;  %s1142_s21 = smov [#allocation7]   ;;  %s864_s25 = scalar_lea.hbm %s1468_s2, 512 }
   0xa   :  { %s46_s22 = sshll.u32 %s1142_s21, 4  ;;  %p865_p0 = scmp.ne.s32.totalorder %s1468_s2, %s864_s25  ;;  %s47_s22 = int_to_ptr.vmem [resolvable:$true] %s46_s22 }
   0xb   :  { %p868_p1 = scmp.lt.u32.totalorder %s864_s25, %s1468_s2 }
   0xd   :  { %p870_p2 = pnand %p868_p1, %p865_p0 }
   0xf   :  { %873 = shalt.err (!%p870_p2)
}
  0x10   :  { %s874_s30 = scalar_lea.vmem %s47_s22, 512  ;;  %p879_p4 = scmp.lt.s32.totalorder %s47_s22, %s47_s22 }
  0x11   :  { %p875_p3 = scmp.ne.s32.totalorder %s47_s22, %s874_s30  ;;  %p880_p5 = scmp.lt.s32.totalorder %s874_s30, %s874_s30 }
  0x13   :  { %p881_p6 = por %p880_p5, %p879_p4 }
  0x15   :  { %p882_p7 = pnand %p881_p6, %p875_p3 }
  0x17   :  { %885 = shalt.err (!%p882_p7)
}
  0x18   :  { %s1143_s0 = smov 64   ;;  %s1144_s17 = smov 4  }
  0x19   :  { %52 = dma.hbm_to_vmem [thread:$0]  %s1468_s2, 512, %s47_s22, [#allocation8], %s1143_s0, %s1143_s0, %s1144_s17  }
  0x1a   :  { %s1145_s20 = smov [#allocation10]   ;;  %s1146_s23 = smov [#allocation4]  }
  0x1b   :  { %s74_s21 = sshll.u32 %s1145_s20, 4  ;;  %s35_s24 = sshll.u32 %s1146_s23, 4  ;;  %s75_s21 = int_to_ptr.vmem [resolvable:$true] %s74_s21  ;;  %s36_s24 = int_to_ptr.vmem [resolvable:$true] %s35_s24 }
  0x1c   :  { %s886_s27 = scalar_lea.hbm %s1472_s6, 256 }
  0x1d   :  { %p887_p8 = scmp.ne.s32.totalorder %s1472_s6, %s886_s27  ;;  %p890_p9 = scmp.lt.u32.totalorder %s886_s27, %s1472_s6 }
  0x1f   :  { %p892_p10 = pnand %p890_p9, %p887_p8 }
  0x21   :  { %895 = shalt.err (!%p892_p10)
}
  0x22   :  { %s896_s2 = scalar_lea.vmem %s75_s21, 256  ;;  %p901_p12 = scmp.lt.s32.totalorder %s75_s21, %s75_s21 }
  0x23   :  { %p897_p11 = scmp.ne.s32.totalorder %s75_s21, %s896_s2  ;;  %p902_p13 = scmp.lt.s32.totalorder %s896_s2, %s896_s2 }
  0x25   :  { %p903_p0 = por %p902_p13, %p901_p12 }
  0x27   :  { %p904_p1 = pnand %p903_p0, %p897_p11 }
  0x29   :  { %907 = shalt.err (!%p904_p1)
}
  0x2a   :  { %80 = dma.hbm_to_vmem [thread:$0]  %s1472_s6, 256, %s75_s21, [#allocation11], %s1143_s0, %s1143_s0, %s1144_s17  }
  0x2b   :  { %s1487_s20 = sld [smem:[#allocation30_spill]] }
  0x31   :  { %s908_s23 = scalar_lea.hbm %s1487_s20, 128 }
  0x32   :  { %p909_p2 = scmp.ne.s32.totalorder %s1487_s20, %s908_s23  ;;  %p912_p3 = scmp.lt.u32.totalorder %s908_s23, %s1487_s20 }
  0x34   :  { %p914_p4 = pnand %p912_p3, %p909_p2 }
  0x36   :  { %917 = shalt.err (!%p914_p4)
}
  0x37   :  { %s918_s29 = scalar_lea.vmem %s36_s24, 128  ;;  %p923_p6 = scmp.lt.s32.totalorder %s36_s24, %s36_s24 }
  0x38   :  { %p919_p5 = scmp.ne.s32.totalorder %s36_s24, %s918_s29  ;;  %p924_p7 = scmp.lt.s32.totalorder %s918_s29, %s918_s29 }
  0x3a   :  { %p925_p8 = por %p924_p7, %p923_p6 }
  0x3c   :  { %p926_p9 = pnand %p925_p8, %p919_p5 }
  0x3e   :  { %929 = shalt.err (!%p926_p9)
}
  0x3f   :  { %38 = dma.hbm_to_vmem [thread:$0]  %s1487_s20, 128, %s36_s24, [#allocation5]  }
  0x40   :  { %s1147_s30 = smov [#allocation9]   ;;  %s1148_s22 = smov [#allocation12]  }
  0x41   :  { %s60_s2 = sshll.u32 %s1147_s30, 4  ;;  %s87_s18 = sshll.u32 %s1148_s22, 4  ;;  %s61_s2 = int_to_ptr.vmem [resolvable:$true] %s60_s2  ;;  %s88_s18 = int_to_ptr.vmem [resolvable:$true] %s87_s18 }
  0x42   :  { %s930_s23 = scalar_lea.hbm %s1470_s4, 1024 }
  0x43   :  { %p931_p10 = scmp.ne.s32.totalorder %s1470_s4, %s930_s23  ;;  %p934_p11 = scmp.lt.u32.totalorder %s930_s23, %s1470_s4 }
  0x45   :  { %p936_p12 = pnand %p934_p11, %p931_p10 }
  0x47   :  { %939 = shalt.err (!%p936_p12)
}
  0x48   :  { %s940_s24 = scalar_lea.vmem %s61_s2, 1024  ;;  %p945_p0 = scmp.lt.s32.totalorder %s61_s2, %s61_s2 }
  0x49   :  { %p941_p13 = scmp.ne.s32.totalorder %s61_s2, %s940_s24  ;;  %p946_p1 = scmp.lt.s32.totalorder %s940_s24, %s940_s24 }
  0x4b   :  { %p947_p2 = por %p946_p1, %p945_p0 }
  0x4d   :  { %p948_p3 = pnand %p947_p2, %p941_p13 }
  0x4f   :  { %951 = shalt.err (!%p948_p3)
}
  0x50   :  { %66 = dma.hbm_to_vmem [thread:$0]  %s1470_s4, 1024, %s61_s2, [#allocation8], %s1143_s0, %s1143_s0, %s1144_s17  }
  0x51   :  { %s952_s30 = scalar_lea.hbm %s1473_s7, 16 }
  0x52   :  { %p953_p4 = scmp.ne.s32.totalorder %s1473_s7, %s952_s30  ;;  %p956_p5 = scmp.lt.u32.totalorder %s952_s30, %s1473_s7 }
  0x54   :  { %p958_p6 = pnand %p956_p5, %p953_p4 }
  0x56   :  { %961 = shalt.err (!%p958_p6)
}
  0x57   :  { %s962_s25 = scalar_lea.vmem %s88_s18, 16  ;;  %s966_s26 = scalar_lea.vmem %s88_s18, 32 }
  0x58   :  { %p963_p7 = scmp.ne.s32.totalorder %s88_s18, %s962_s25  ;;  %p967_p8 = scmp.lt.s32.totalorder %s88_s18, %s88_s18 }
  0x59   :  { %p968_p9 = scmp.lt.s32.totalorder %s966_s26, %s962_s25 }
  0x5b   :  { %p969_p10 = por %p968_p9, %p967_p8 }
  0x5d   :  { %p970_p11 = pnand %p969_p10, %p963_p7 }
  0x5f   :  { %973 = shalt.err (!%p970_p11)
}
  0x60   :  { %90 = dma.hbm_to_vmem [thread:$0]  %s1473_s7, 16, %s88_s18, [#allocation11]  }
  0x61   :  { %1128 = dma.done.wait [#allocation5], 128  }
  0x62   :  { %1129 = vsyncadd [#allocation5], 4294967168 }
  0x63   :  { %1130 = dma.done.wait [#allocation8], 1536  }
  0x64   :  { %1131 = vsyncadd [#allocation8], 4294965760 }
  0x65   :  { %1132 = dma.done.wait [#allocation11], 272  }
  0x66   :  { %1133 = vsyncadd [#allocation11], 4294967024  ;;  %v1149_v0 = vmov 0.0   ;;  %vm1150_vm0 = vmmov 0   ;;  %v820_v1 = vld [vmem:[#allocation7] sm:$0xff]   ;;  %v822_v3 = vld [vmem:[#allocation7 + $0x8] sm:$0xff]  }
  0x67   :  { %741 = vmatprep.subr.bf16.mxu1 %v1149_v0  ;;  %773 = vmatprep.subr.bf16.mxu0 %v1149_v0  ;;  %v821_v2 = vld [vmem:[#allocation10] sm:$0xff]   ;;  %v823_v4 = vld [vmem:[#allocation10 + $0x8] sm:$0xff]   ;;  %v312_v5 = vld [vmem:[%s1467_s1] sm:$0xff]  ;;  %vm338_vm1 = vcmask 261120   ;;  %vm159_vm2 = vcmask 523264   ;;  %v1151_v55 = vmov 0  }
  0x68   :  { %777 = vmatprep.mubr.msk.bf16.mxu0 %vm1150_vm0, %v1149_v0  ;;  %749 = vmatprep.mubr.msk.bf16.mxu1 %vm1150_vm0, %v1149_v0  ;;  %v313_v6 = vld [vmem:[%s1467_s1 + $0x8] sm:$0xff]  ;;  %v824_v7 = vld [vmem:[#allocation7 + $0x10] sm:$0xff]   ;;  %v826_v9 = vld [vmem:[%s1474_s8] sm:$0xff]   ;;  %vm568_vm6 = vcmask 7168   ;;  %s1153_s18 = smov [#allocation17]  }
  0x69   :  { %742 = vmatpush3.bf16.msra.mxu1 %v820_v1  ;;  %774 = vmatpush3.bf16.msra.mxu0 %v821_v2  ;;  %v314_v8 = vpack.c.bf16 %v313_v6, %v312_v5  ;;  %v825_v10 = vld [vmem:[#allocation7 + $0x18] sm:$0xff]   ;;  %v827_v12 = vld [vmem:[%s1474_s8 + $0x8] sm:$0xff]   ;;  %v829_v15 = vld [vmem:[%s1474_s8 + $0x10] sm:$0xff]   ;;  %s622_s27 = sshll.u32 %s1153_s18, 4  ;;  %s623_s27 = int_to_ptr.vmem [resolvable:$true] %s622_s27 }
  0x6a   :  { %743 = vmatprep.subr.bf16.mxu1 %v1149_v0  ;;  %775 = vmatprep.subr.bf16.mxu0 %v1149_v0  ;;  %v118_v11 = vld [vmem:[#allocation4] sm:$0xff]  ;;  %v828_v14 = vld [vmem:[#allocation9] sm:$0xff]   ;;  %v830_v16 = vld [vmem:[#allocation9 + $0x8] sm:$0xff]  }
  0x6b   :  { %v119_v13 = vpack.c.bf16 %v118_v11, %v118_v11  ;;  %v831_v17 = vld [vmem:[%s1474_s8 + $0x18] sm:$0xff]   ;;  %v833_v19 = vld [vmem:[%s1474_s8 + $0x20] sm:$0xff]   ;;  %v835_v21 = vld [vmem:[%s1474_s8 + $0x28] sm:$0xff]  }
  0x6c   :  { %v832_v18 = vld [vmem:[#allocation9 + $0x10] sm:$0xff]   ;;  %v834_v20 = vld [vmem:[#allocation9 + $0x18] sm:$0xff]   ;;  %v836_v22 = vld [vmem:[#allocation9 + $0x20] sm:$0xff]  }
  0x6d   :  { %744 = vmatpush3.bf16.msra.mxu1 %v822_v3  ;;  %776 = vmatpush3.bf16.msra.mxu0 %v823_v4  ;;  %v837_v23 = vld [vmem:[%s1474_s8 + $0x30] sm:$0xff]   ;;  %v839_v25 = vld [vmem:[%s1474_s8 + $0x38] sm:$0xff]   ;;  %v841_v27 = vld [vmem:[#allocation9 + $0x38] sm:$0xff]  }
  0x6e   :  { %745 = vmatprep.subr.bf16.mxu1 %v1149_v0  ;;  %781 = vmatprep.subr.bf16.mxu0 %v1149_v0  ;;  %v838_v24 = vld [vmem:[#allocation9 + $0x28] sm:$0xff]   ;;  %v840_v26 = vld [vmem:[#allocation9 + $0x30] sm:$0xff]   ;;  %v684_v35 = vld [vmem:[%s1469_s3] ss:$0 sm:$0xff] }
  0x6f   :  { %v698_v28 = vld [vmem:[#allocation12] ss:$0 sm:$0xff]  ;;  %v711_v46 = vld [vmem:[%s1475_s9] ss:$0 sm:$0xff] }
  0x70   :  { %778 = vmatmul.mubr.msk.bf16.vlgmr.msra.gmra.mrb[0].mxu0 %vm338_vm1, %v314_v8  ;;  %v710_v54 = vld [vmem:[%s1471_s5] ss:$0 sm:$0xff]  ;;  %s1152_s5 = smov [#allocation14]  }
  0x71   :  { %746 = vmatpush3.bf16.msra.mxu1 %v824_v7  ;;  %782 = vmatpush3.bf16.msra.mxu0 %v826_v9  ;;  %s602_s9 = sshll.u32 %s1152_s5, 4  ;;  %s603_s9 = int_to_ptr.vmem [resolvable:$true] %s602_s9 }
  0x72   :  { %747 = vmatprep.subr.bf16.mxu1 %v1149_v0  ;;  %783 = vmatprep.subr.bf16.mxu0 %v1149_v0  ;;  %s974_s28 = scalar_lea.vmem %s603_s9, 128  ;;  %p979_p13 = scmp.lt.s32.totalorder %s603_s9, %s603_s9 }
  0x73   :  { %797 = vmatprep.mubr.msk.bf16.mxu0 %vm1150_vm0, %v1149_v0  ;;  %p975_p12 = scmp.ne.s32.totalorder %s603_s9, %s974_s28  ;;  %p980_p0 = scmp.lt.s32.totalorder %s974_s28, %s974_s28 }
  0x75   :  { %748 = vmatpush3.bf16.msra.mxu1 %v825_v10  ;;  %784 = vmatpush3.bf16.msra.mxu0 %v827_v12  ;;  %p981_p1 = por %p980_p0, %p979_p13 }
  0x76   :  { %753 = vmatprep.subr.bf16.mxu1 %v1149_v0  ;;  %785 = vmatprep.subr.bf16.mxu0 %v1149_v0 }
  0x77   :  { %p982_p2 = pnand %p981_p1, %p975_p12 }
  0x78   :  { %750 = vmatmul.mubr.msk.bf16.vlgmr.msra.gmra.mrb[0].mxu1 %vm159_vm2, %v119_v13 }
  0x79   :  { %754 = vmatpush3.bf16.msra.mxu1 %v828_v14  ;;  %769 = vmatprep.mubr.msk.bf16.mxu1 %vm1150_vm0, %v1149_v0 }
  0x7a   :  { %755 = vmatprep.subr.bf16.mxu1 %v1149_v0  ;;  %786 = vmatpush3.bf16.msra.mxu0 %v829_v15 }
  0x7b   :  { %787 = vmatprep.subr.bf16.mxu0 %v1149_v0 }
  0x7d   :  { %756 = vmatpush3.bf16.msra.mxu1 %v830_v16 }
  0x7e   :  { %757 = vmatprep.subr.bf16.mxu1 %v1149_v0  ;;  %788 = vmatpush3.bf16.msra.mxu0 %v831_v17 }
  0x7f   :  { %789 = vmatprep.subr.bf16.mxu0 %v1149_v0 }
  0x81   :  { %758 = vmatpush3.bf16.msra.mxu1 %v832_v18 }
  0x82   :  { %759 = vmatprep.subr.bf16.mxu1 %v1149_v0  ;;  %790 = vmatpush3.bf16.msra.mxu0 %v833_v19 }
  0x83   :  { %791 = vmatprep.subr.bf16.mxu0 %v1149_v0 }
  0x85   :  { %760 = vmatpush3.bf16.msra.mxu1 %v834_v20 }
  0x86   :  { %761 = vmatprep.subr.bf16.mxu1 %v1149_v0  ;;  %792 = vmatpush3.bf16.msra.mxu0 %v835_v21 }
  0x87   :  { %793 = vmatprep.subr.bf16.mxu0 %v1149_v0 }
  0x89   :  { %762 = vmatpush3.bf16.msra.mxu1 %v836_v22 }
  0x8a   :  { %763 = vmatprep.subr.bf16.mxu1 %v1149_v0  ;;  %794 = vmatpush3.bf16.msra.mxu0 %v837_v23 }
  0x8b   :  { %795 = vmatprep.subr.bf16.mxu0 %v1149_v0 }
  0x8d   :  { %764 = vmatpush3.bf16.msra.mxu1 %v838_v24 }
  0x8e   :  { %765 = vmatprep.subr.bf16.mxu1 %v1149_v0  ;;  %796 = vmatpush3.bf16.msra.mxu0 %v839_v25 }
  0x91   :  { %766 = vmatpush3.bf16.msra.mxu1 %v840_v26 }
  0x92   :  { %767 = vmatprep.subr.bf16.mxu1 %v1149_v0 }
  0x95   :  { %768 = vmatpush3.bf16.msra.mxu1 %v841_v27 }
 0x143   :  { %v376_v29 = vpop.f32.mrb[0].mxu0 }
 0x144   :  { %v377_v30 = vadd.f32 %v698_v28, %v376_v29  ;;  %v779_v31 = vpop.f32.mrb[1].mxu0 }
 0x145   :  { %v379_v32 = vpop.f32.mrb[2].mxu0 }
 0x146   :  { %842 = vtanh.f32 %v377_v30  ;;  %v380_v33 = vadd.f32 %v698_v28, %v379_v32  ;;  %v780_v34 = vpop.f32.mrb[3].mxu0 }
 0x148   :  { %844 = vtanh.f32 %v380_v33 }
 0x14b   :  { %v197_v36 = vpop.f32.mrb[0].mxu1 }
 0x14c   :  { %v198_v37 = vadd.f32 %v684_v35, %v197_v36  ;;  %v751_v38 = vpop.f32.mrb[1].mxu1 }
 0x14d   :  { %v200_v39 = vpop.f32.mrb[2].mxu1 }
 0x14e   :  { %846 = vtanh.f32 %v198_v37  ;;  %v752_v40 = vpop.f32.mrb[3].mxu1 }
 0x150   :  { %v843_v41 = vpop.eup %842 }
 0x152   :  { %v845_v42 = vpop.eup %844 }
 0x153   :  { %v387_v43 = vpack.c.bf16 %v845_v42, %v843_v41 }
 0x155   :  { %798 = vmatmul.mubr.bf16.vlgmr.msra.gmra.mrb[4].mxu0 %v387_v43 }
 0x158   :  { %v847_v44 = vpop.eup %846 }
 0x159   :  { %v205_v45 = vpack.c.bf16 %v847_v44, %v847_v44 }
 0x15b   :  { %770 = vmatmul.mubr.bf16.vlgmr.msra.gmra.mrb[4].mxu1 %v205_v45 }
 0x228   :  { %v486_v47 = vpop.f32.mrb[4].mxu0 }
 0x229   :  { %v518_v48 = vadd.f32 %v711_v46, %v486_v47  ;;  %v799_v49 = vpop.f32.mrb[5].mxu0 }
 0x22a   :  { %v489_v50 = vpop.f32.mrb[6].mxu0 }
 0x22b   :  { %v713_v51 = vmul.f32 -1.442695, %v518_v48  ;;  %vm544_vm3 = vcmp.ge.f32.partialorder %v518_v48, 0.0  ;;  %v519_v52 = vadd.f32 %v711_v46, %v489_v50  ;;  %v800_v53 = vpop.f32.mrb[7].mxu0 }
 0x22c   :  { %v545_v56 = vsel %vm544_vm3, 1, %v1151_v55 }
 0x22d   :  { %848 = vpow2.f32 %v713_v51  ;;  %v714_v57 = vmul.f32 -1.442695, %v519_v52  ;;  %vm547_vm4 = vcmp.ge.f32.partialorder %v519_v52, 0.0  ;;  %546 = vst [vmem:[#allocation17] sm:$0xff] %v545_v56 }
 0x22e   :  { %v304_v58 = vpop.f32.mrb[4].mxu1  ;;  %v548_v61 = vsel %vm547_vm4, 1, %v1151_v55 }
 0x22f   :  { %v508_v59 = vadd.f32 %v710_v54, %v304_v58  ;;  %v771_v60 = vpop.f32.mrb[5].mxu1  ;;  %850 = vpow2.f32 %v714_v57  ;;  %549 = vst [vmem:[#allocation20] sm:$0xff] %v548_v61 }
 0x230   :  { %v307_v62 = vpop.f32.mrb[6].mxu1 }
 0x231   :  { %v712_v63 = vmul.f32 -1.442695, %v508_v59  ;;  %vm541_vm5 = vcmp.ge.f32.partialorder %v508_v59, 0.0  ;;  %v772_v0 = vpop.f32.mrb[7].mxu1 }
 0x232   :  { %v542_v1 = vsel %vm541_vm5, 1, %v1151_v55 }
 0x233   :  { %852 = vpow2.f32 %v712_v63  ;;  %543 = vst [vmem:[#allocation14] sm:$0xff] %v542_v1 }
 0x237   :  { %v849_v2 = vpop.eup %848 }
 0x238   :  { %v532_v3 = vadd.f32 1.0, %v849_v2 }
 0x239   :  { %v851_v4 = vpop.eup %850 }
 0x23a   :  { %854 = vrcp.f32 %v532_v3  ;;  %v533_v5 = vadd.f32 1.0, %v851_v4 }
 0x23c   :  { %856 = vrcp.f32 %v533_v5 }
 0x23d   :  { %v853_v6 = vpop.eup %852 }
 0x23e   :  { %v523_v7 = vadd.f32 1.0, %v853_v6 }
 0x240   :  { %858 = vrcp.f32 %v523_v7 }
 0x244   :  { %v855_v8 = vpop.eup %854 }
 0x245   :  { %539 = vst [vmem:[#allocation16] sm:$0xff] %v855_v8 }
 0x246   :  { %v857_v9 = vpop.eup %856 }
 0x247   :  { %540 = vst [vmem:[#allocation19] sm:$0xff] %v857_v9 }
 0x24a   :  { %v859_v10 = vpop.eup %858 }
 0x24b   :  { %538 = vst [vmem:[#allocation13] sm:$0xff] %v859_v10  ;;  %v550_v11 = vsub.f32 %v859_v10, %v855_v8  ;;  %v554_v12 = vsub.f32 %v859_v10, %v857_v9 }
 0x24d   :  { %v551_v13 = vmul.f32 %v550_v11, %v550_v11  ;;  %v555_v14 = vmul.f32 %v554_v12, %v554_v12 }
 0x24f   :  { %552 = vadd.xlane.f32.xlu0 %v551_v13 }
 0x253   :  { %556 = vadd.xlane.f32.xlu0 %v555_v14 }
 0x2dc   :  { %v553_v15 = vpop.xlane.xlu0 %552 }
 0x2e0   :  { %v557_v16 = vpop.xlane.xlu0 %556 }
 0x2e1   :  { %v558_v17 = vsub.f32 %v557_v16, %v553_v15 }
 0x2e3   :  { %v560_v18 = vand.u32 2147483647, %v558_v17  ;;  %v559_v24 = vmin.f32 %v558_v17, 0.0 }
 0x2e5   :  { %v561_v19 = vsub.f32 0.0, %v560_v18 }
 0x2e7   :  { %v562_v20 = vmul.f32 1.442695, %v561_v19 }
 0x2e9   :  { %860 = vpow2.f32 %v562_v20 }
 0x2f3   :  { %v861_v21 = vpop.eup %860 }
 0x2f4   :  { %v564_v22 = vadd.f32 1.0, %v861_v21 }
 0x2f6   :  { %862 = vlog2.f32 %v564_v22 }
 0x300   :  { %v863_v23 = vpop.eup %862 }
 0x301   :  { %v566_v25 = vmul.f32 0.6931472, %v863_v23 }
 0x303   :  { %v567_v26 = vsub.f32 %v559_v24, %v566_v25 }
 0x305   :  { %v569_v27 = vsel %vm568_vm6, %v567_v26, 0.0 }
 0x306   :  { %570 = vadd.xlane.f32.xlu1 %v569_v27 }
 0x307   :  { %985 = shalt.err (!%p982_p2)
}
 0x308   :  { %s986_s20 = scalar_lea.hbm %s1477_s11, 128 }
 0x309   :  { %p987_p3 = scmp.ne.s32.totalorder %s1477_s11, %s986_s20  ;;  %p990_p4 = scmp.lt.u32.totalorder %s986_s20, %s1477_s11 }
 0x30b   :  { %p992_p5 = pnand %p990_p4, %p987_p3 }
 0x30d   :  { %995 = shalt.err (!%p992_p5)
}
 0x30e   :  { %605 = dma.vmem_to_hbm [thread:$0]  %s603_s9, 128, %s1477_s11, [#allocation15]  }
 0x30f   :  { %s996_s16 = scalar_lea.vmem %s623_s27, 128  ;;  %p1001_p7 = scmp.lt.s32.totalorder %s623_s27, %s623_s27 }
 0x310   :  { %p997_p6 = scmp.ne.s32.totalorder %s623_s27, %s996_s16  ;;  %p1002_p8 = scmp.lt.s32.totalorder %s996_s16, %s996_s16 }
 0x312   :  { %p1003_p9 = por %p1002_p8, %p1001_p7 }
 0x314   :  { %p1004_p10 = pnand %p1003_p9, %p997_p6 }
 0x316   :  { %1007 = shalt.err (!%p1004_p10)
}
 0x317   :  { %s1008_s26 = scalar_lea.hbm %s1479_s13, 128 }
 0x318   :  { %p1009_p11 = scmp.ne.s32.totalorder %s1479_s13, %s1008_s26  ;;  %p1012_p12 = scmp.lt.u32.totalorder %s1008_s26, %s1479_s13 }
 0x31a   :  { %p1014_p13 = pnand %p1012_p12, %p1009_p11 }
 0x31c   :  { %1017 = shalt.err (!%p1014_p13)
}
 0x31d   :  { %625 = dma.vmem_to_hbm [thread:$0]  %s623_s27, 128, %s1479_s13, [#allocation18]  }
 0x31e   :  { %s1154_s3 = smov [#allocation20]   ;;  %s1155_s5 = smov [#allocation13]  }
 0x31f   :  { %s642_s2 = sshll.u32 %s1154_s3, 4  ;;  %s592_s9 = sshll.u32 %s1155_s5, 4  ;;  %s643_s2 = int_to_ptr.vmem [resolvable:$true] %s642_s2  ;;  %s593_s9 = int_to_ptr.vmem [resolvable:$true] %s592_s9 }
 0x320   :  { %s1018_s18 = scalar_lea.vmem %s643_s2, 128  ;;  %p1023_p1 = scmp.lt.s32.totalorder %s643_s2, %s643_s2 }
 0x321   :  { %p1019_p0 = scmp.ne.s32.totalorder %s643_s2, %s1018_s18  ;;  %p1024_p2 = scmp.lt.s32.totalorder %s1018_s18, %s1018_s18 }
 0x323   :  { %p1025_p3 = por %p1024_p2, %p1023_p1 }
 0x325   :  { %p1026_p4 = pnand %p1025_p3, %p1019_p0 }
 0x327   :  { %1029 = shalt.err (!%p1026_p4)
}
 0x328   :  { %s1030_s24 = scalar_lea.hbm %s1481_s15, 128 }
 0x329   :  { %p1031_p5 = scmp.ne.s32.totalorder %s1481_s15, %s1030_s24  ;;  %p1034_p6 = scmp.lt.u32.totalorder %s1030_s24, %s1481_s15 }
 0x32b   :  { %p1036_p7 = pnand %p1034_p6, %p1031_p5 }
 0x32d   :  { %1039 = shalt.err (!%p1036_p7)
}
 0x32e   :  { %645 = dma.vmem_to_hbm [thread:$0]  %s643_s2, 128, %s1481_s15, [#allocation21]  }
 0x32f   :  { %s1040_s30 = scalar_lea.vmem %s593_s9, 128  ;;  %p1045_p9 = scmp.lt.s32.totalorder %s593_s9, %s593_s9 }
 0x330   :  { %p1041_p8 = scmp.ne.s32.totalorder %s593_s9, %s1040_s30  ;;  %p1046_p10 = scmp.lt.s32.totalorder %s1040_s30, %s1040_s30 }
 0x332   :  { %p1047_p11 = por %p1046_p10, %p1045_p9 }
 0x334   :  { %p1048_p12 = pnand %p1047_p11, %p1041_p8 }
 0x336   :  { %1051 = shalt.err (!%p1048_p12)
}
 0x337   :  { %s1052_s16 = scalar_lea.hbm %s1476_s10, 128 }
 0x338   :  { %p1053_p13 = scmp.ne.s32.totalorder %s1476_s10, %s1052_s16  ;;  %p1056_p0 = scmp.lt.u32.totalorder %s1052_s16, %s1476_s10 }
 0x33a   :  { %p1058_p1 = pnand %p1056_p0, %p1053_p13 }
 0x33c   :  { %1061 = shalt.err (!%p1058_p1)
}
 0x33d   :  { %595 = dma.vmem_to_hbm [thread:$0]  %s593_s9, 128, %s1476_s10, [#allocation6]  }
 0x33e   :  { %s1156_s7 = smov [#allocation16]   ;;  %s1157_s11 = smov [#allocation19]  }
 0x33f   :  { %s612_s8 = sshll.u32 %s1156_s7, 4  ;;  %s632_s17 = sshll.u32 %s1157_s11, 4  ;;  %s613_s8 = int_to_ptr.vmem [resolvable:$true] %s612_s8  ;;  %s633_s17 = int_to_ptr.vmem [resolvable:$true] %s632_s17 }
 0x340   :  { %s1062_s3 = scalar_lea.vmem %s613_s8, 128  ;;  %p1067_p3 = scmp.lt.s32.totalorder %s613_s8, %s613_s8 }
 0x341   :  { %p1063_p2 = scmp.ne.s32.totalorder %s613_s8, %s1062_s3  ;;  %p1068_p4 = scmp.lt.s32.totalorder %s1062_s3, %s1062_s3 }
 0x343   :  { %p1069_p5 = por %p1068_p4, %p1067_p3 }
 0x345   :  { %p1070_p6 = pnand %p1069_p5, %p1063_p2 }
 0x347   :  { %1073 = shalt.err (!%p1070_p6)
}
 0x348   :  { %s1074_s18 = scalar_lea.hbm %s1478_s12, 128 }
 0x349   :  { %p1075_p7 = scmp.ne.s32.totalorder %s1478_s12, %s1074_s18  ;;  %p1078_p8 = scmp.lt.u32.totalorder %s1074_s18, %s1478_s12 }
 0x34b   :  { %p1080_p9 = pnand %p1078_p8, %p1075_p7 }
 0x34d   :  { %1083 = shalt.err (!%p1080_p9)
}
 0x34e   :  { %615 = dma.vmem_to_hbm [thread:$0]  %s613_s8, 128, %s1478_s12, [#allocation15]  }
 0x34f   :  { %s1084_s29 = scalar_lea.vmem %s633_s17, 128  ;;  %p1089_p11 = scmp.lt.s32.totalorder %s633_s17, %s633_s17 }
 0x350   :  { %p1085_p10 = scmp.ne.s32.totalorder %s633_s17, %s1084_s29  ;;  %p1090_p12 = scmp.lt.s32.totalorder %s1084_s29, %s1084_s29 }
 0x352   :  { %p1091_p13 = por %p1090_p12, %p1089_p11 }
 0x354   :  { %p1092_p0 = pnand %p1091_p13, %p1085_p10 }
 0x356   :  { %1095 = shalt.err (!%p1092_p0)
}
 0x357   :  { %s1096_s6 = scalar_lea.hbm %s1480_s14, 128 }
 0x358   :  { %p1097_p1 = scmp.ne.s32.totalorder %s1480_s14, %s1096_s6  ;;  %p1100_p2 = scmp.lt.u32.totalorder %s1096_s6, %s1480_s14 }
 0x35a   :  { %p1102_p3 = pnand %p1100_p2, %p1097_p1 }
 0x35c   :  { %1105 = shalt.err (!%p1102_p3)
}
 0x35d   :  { %635 = dma.vmem_to_hbm [thread:$0]  %s633_s17, 128, %s1480_s14, [#allocation18]   ;;  %vm584_vm7 = vcmask 0  }
 0x35e   :  { %s1158_s26 = smov [#allocation22]  }
 0x35f   :  { %s652_s4 = sshll.u32 %s1158_s26, 4  ;;  %s653_s4 = int_to_ptr.vmem [resolvable:$true] %s652_s4 }
 0x360   :  { %s1106_s0 = scalar_lea.vmem %s653_s4, 16  ;;  %s1110_s14 = scalar_lea.vmem %s653_s4, 32 }
 0x361   :  { %p1107_p4 = scmp.ne.s32.totalorder %s653_s4, %s1106_s0  ;;  %p1111_p5 = scmp.lt.s32.totalorder %s653_s4, %s653_s4 }
 0x362   :  { %p1112_p6 = scmp.lt.s32.totalorder %s1110_s14, %s1106_s0 }
 0x364   :  { %p1113_p7 = por %p1112_p6, %p1111_p5 }
 0x366   :  { %p1114_p8 = pnand %p1113_p7, %p1107_p4 }
 0x393   :  { %v571_v28 = vpop.xlane.xlu1 %570 }
 0x394   :  { %v572_v29 = vrot.slane %v571_v28, 4 }
 0x396   :  { %v573_v30 = vadd.f32 %v572_v29, %v571_v28 }
 0x398   :  { %v574_v31 = vrot.slane %v573_v30, 2 }
 0x39a   :  { %v575_v32 = vadd.f32 %v574_v31, %v573_v30 }
 0x39c   :  { %v576_v33 = vrot.slane %v575_v32, 1 }
 0x39e   :  { %v577_v34 = vadd.f32 %v576_v33, %v575_v32 }
 0x3a0   :  { %801 = vpush %v577_v34 }
 0x3d1   :  { %s802_s23 = spop %801 }
 0x3d2   :  { %s581_s25 = smul.f32 0.125, %s802_s23 }
 0x3d4   :  { %s582_s15 = ssub.f32 0.0, %s581_s25 }
 0x3d6   :  { %v583_v35 = vstv %s582_s15 }
 0x3d7   :  { %585 = vst.msk [vmem:[#allocation22] sm:$0x1] %vm584_vm7, %v583_v35 }
 0x3d8   :  { %1117 = shalt.err (!%p1114_p8)
}
 0x3d9   :  { %s1488_s11 = sld [smem:[#allocation31_spill]] }
 0x3df   :  { %s1118_s17 = scalar_lea.hbm %s1488_s11, 16 }
 0x3e0   :  { %p1119_p9 = scmp.ne.s32.totalorder %s1488_s11, %s1118_s17  ;;  %p1122_p10 = scmp.lt.u32.totalorder %s1118_s17, %s1488_s11 }
 0x3e2   :  { %p1124_p11 = pnand %p1122_p10, %p1119_p9 }
 0x3e4   :  { %1127 = shalt.err (!%p1124_p11)
}
 0x3e5   :  { %655 = dma.vmem_to_hbm [thread:$0]  %s653_s4, 16, %s1488_s11, [#allocation21]  }
 0x3e6   :  { %1134 = dma.done.wait [#allocation6], 128  }
 0x3e7   :  { %1135 = vsyncadd [#allocation6], 4294967168 }
 0x3e8   :  { %1136 = dma.done.wait [#allocation15], 256  }
 0x3e9   :  { %1137 = vsyncadd [#allocation15], 4294967040 }
 0x3ea   :  { %1138 = dma.done.wait [#allocation18], 256  }
 0x3eb   :  { %1139 = vsyncadd [#allocation18], 4294967040 }
 0x3ec   :  { %1140 = dma.done.wait [#allocation21], 144  }
 0x3ed   :  { %1141 = vsyncadd [#allocation21], 4294967152 }
 0x3ee   :  { %677 = vsyncpa [#allocation5], 1 }
 0x3ef   :  { %678 = vsyncpa [#allocation8], 1 }
 0x3f0   :  { %679 = vsyncpa [#allocation11], 1 }
 0x3f1   :  { %680 = vsyncpa [#allocation6], 1 }
 0x3f2   :  { %681 = vsyncpa [#allocation15], 1 }
 0x3f3   :  { %682 = vsyncpa [#allocation18], 1 }
 0x3f4   :  { %683 = vsyncpa [#allocation21], 1 }

</bundles_post_ra>
